<compile_context>
chip_gen: v6e
topology: v6e:2x2x1
jax: 0.10.0
libtpu: 0.0.40
codegen_flags: <defaults>
</compile_context>

<pallas_src>
import functools

import jax
import jax.numpy as jnp
from jax.experimental import pallas as pl
from jax.experimental.pallas import tpu as pltpu


def _round_up(x, m):
    return (x + m - 1) // m * m


def _cdiv(a, b):
    return -(-a // b)


# ----------------------------------------------------------------------------
# Small-image fast path: whole image resident in VMEM, one grid step.
# ----------------------------------------------------------------------------
def _make_resident_kernel(ho, wo, kh, kw):
    def kernel(w_ref, b_ref, x_ref, o_ref):
        # w_ref: SMEM (kh*kw,) weights; b_ref: SMEM (1,) bias; x_ref: VMEM (H, W).
        x = x_ref[...]
        acc = None
        for ki in range(kh):
            for kj in range(kw):
                term = x[ki:ki + ho, kj:kj + wo] * w_ref[ki * kw + kj]
                acc = term if acc is None else acc + term
        o_ref[...] = acc + b_ref[0]          # single fused store, exact shape

    return kernel


# ----------------------------------------------------------------------------
# Large-image path: row-tiled grid, manual HBM->VMEM double buffering.
# ----------------------------------------------------------------------------
def _make_tiled_kernel(H, W, tile_h, tile_in, w_pad, kh, kw, off_last):
    n_w = kh * kw

    def kernel(w_ref, b_ref, x_hbm, o_ref, xbuf, sem):
        # w_ref/b_ref: SMEM scalars.  x_hbm: raw (unpadded) image in HBM.
        # o_ref: VMEM (tile_h, w_pad) output block.  xbuf: (2, buf_rows, w_pad)
        # input double buffer.  sem: (2,) DMA semaphores.
        i = pl.program_id(0)
        n = pl.num_programs(0)
        slot = i % 2

        # Hoist all SMEM scalar reads above any DMA wait (wait breaks sst->sld
        # forwarding, which would stall these at the start of compute).
        w = [w_ref[k] for k in range(n_w)]
        b = b_ref[0]

        def fetch(block, buf_slot):
            # Clamp so the halo of the last tile stays inside the real image;
            # the shifted rows only affect output rows that get sliced off.
            row0 = jnp.minimum(block * tile_h, H - tile_in)
            return pltpu.make_async_copy(
                x_hbm.at[pl.ds(row0, tile_in)],                      # (tile_in, W)
                xbuf.at[buf_slot, pl.ds(0, tile_in), pl.ds(0, W)],   # sub-window
                sem.at[buf_slot],
            )

        # Prime the pipeline on the first grid step.
        @pl.when(i == 0)
        def _():
            fetch(0, 0).start()

        # Prefetch the next row tile while we compute on the current one.
        @pl.when(i + 1 < n)
        def _():
            fetch(i + 1, (i + 1) % 2).start()

        # Wait on the current tile's DMA, built from the SAME indices as its
        # .start() (issued last step, or by the priming block above).
        fetch(i, slot).wait()

        # (buf_rows, w_pad).  Columns >= W and rows >= tile_in were never
        # DMA'd; they only ever feed output columns >= Wo / junk rows of the
        # last tile, all of which the wrapper slices off.
        x = xbuf[slot]

        def accumulate(off):
            # off is a *static* row offset (0 everywhere except the last tile).
            acc = None
            for kj in range(kw):
                # One lane-rotate per kj on the full slab (hoisted out of ki).
                slab = x if kj == 0 else pltpu.roll(x, w_pad - kj, 1)
                for ki in range(kh):
                    rows = slab[off + ki: off + ki + tile_h, :]
                    term = rows * w[ki * kw + kj]
                    acc = term if acc is None else acc + term
            return acc + b

        if off_last == 0:
            o_ref[...] = accumulate(0)
        else:
            @pl.when(i < n - 1)
            def _():
                o_ref[...] = accumulate(0)

            @pl.when(i == n - 1)
            def _():
                o_ref[...] = accumulate(off_last)

    return kernel


# ----------------------------------------------------------------------------
# Wrapper / dispatch
# ----------------------------------------------------------------------------
_DEF_RESIDENT_BUDGET = 4 << 20     # below this (in+out bytes): resident path
_TILE_VMEM_BUDGET = 24 << 20       # per-step VMEM footprint target (tiled path)
_TILED_VMEM_LIMIT = 48 << 20       # scoped VMEM limit (fits v7x's 64 MiB VMEM)


@functools.partial(
    jax.jit, static_argnames=("tile_h_target", "resident_budget_bytes"))
def conv2d_forward(x, weight, bias, *, tile_h_target=512,
                   resident_budget_bytes=_DEF_RESIDENT_BUDGET):
    """Pallas equivalent of Conv2D.forward: corr2d(x, weight) + bias."""
    H, W = x.shape
    KH, KW = weight.shape
    Ho, Wo = H - KH + 1, W - KW + 1
    assert Ho > 0 and Wo > 0, "kernel must be no larger than the image"

    # TODO(synk): optional bf16 input path (bf16 DMA + f32 accumulate) on v6e/v7x.
    x32 = x.astype(jnp.float32)
    w_flat = weight.astype(jnp.float32).reshape(-1)
    b = bias.astype(jnp.float32).reshape(-1)

    smem = pltpu.MemorySpace.SMEM
    in_bytes = 4 * H * W
    out_bytes = 4 * Ho * Wo

    # --- tiled-path sizing (all static Python ints) ---
    w_pad = _round_up(max(W, 128), 128)
    row_bytes = 4 * w_pad
    # Output rows affordable per step: 2x input slabs (+halo), (KW-1) rolled
    # slab temporaries + accumulator, 2x (auto-pipelined) output blocks.
    cap = _TILE_VMEM_BUDGET // row_bytes // (KW + 4)
    cap = min(tile_h_target, (cap // 8) * 8, (Ho // 8) * 8)

    use_tiled = (in_bytes + out_bytes > resident_budget_bytes) and cap >= 8

    if not use_tiled:
        # Small image (or pathological wide-but-short shape): everything lives
        # in VMEM for a single step; exact-shape output, no pad, no post-slice.
        # TODO(synk): add a width-tiling grid axis for images too wide for VMEM.
        kernel = _make_resident_kernel(Ho, Wo, KH, KW)
        return pl.pallas_call(
            kernel,
            out_shape=jax.ShapeDtypeStruct((Ho, Wo), jnp.float32),
            in_specs=[
                pl.BlockSpec(memory_space=smem),                 # flat weights
                pl.BlockSpec(memory_space=smem),                 # bias
                pl.BlockSpec(memory_space=pltpu.MemorySpace.VMEM),
            ],
            out_specs=pl.BlockSpec(memory_space=pltpu.MemorySpace.VMEM),
        )(w_flat, b, x32)

    # --- large-image path: balanced row tiles + manual double buffering ---
    tiles = _cdiv(Ho, cap)
    tile_h = min(cap, _round_up(_cdiv(Ho, tiles), 8))   # balanced, multiple of 8
    num_tiles = _cdiv(Ho, tile_h)
    off_last = num_tiles * tile_h - Ho                  # junk rows in last tile
    tile_in = tile_h + KH - 1                           # row tile + halo
    buf_rows = _round_up(tile_in + off_last, 8)         # guard rows for last tile
    assert tile_in <= H
    # Roll-wrap invariant: wrapped columns land at indices >= Wo (sliced off).
    assert Wo <= w_pad - (KW - 1)

    kernel = _make_tiled_kernel(H, W, tile_h, tile_in, w_pad, KH, KW, off_last)

    out_padded = pl.pallas_call(
        kernel,
        out_shape=jax.ShapeDtypeStruct((num_tiles * tile_h, w_pad), jnp.float32),
        grid=(num_tiles,),
        in_specs=[
            pl.BlockSpec(memory_space=smem),     # flat weights
            pl.BlockSpec(memory_space=smem),     # bias
            pl.BlockSpec(memory_space=pl.ANY),   # raw image stays in HBM
        ],
        out_specs=pl.BlockSpec((tile_h, w_pad), lambda i: (i, 0)),
        scratch_shapes=[
            pltpu.VMEM((2, buf_rows, w_pad), jnp.float32),   # input double buffer
            pltpu.SemaphoreType.DMA((2,)),
        ],
        compiler_params=pltpu.CompilerParams(
            # Cross-step manual prefetch assumes sequential grid execution.
            # TODO(synk): per-core pipeline priming (core-local "first step"
            # detection) would let this axis be "parallel" on v7x megacore.
            dimension_semantics=("arbitrary",),
            vmem_limit_bytes=_TILED_VMEM_LIMIT,
        ),
    )(w_flat, b, x32)

    # NOTE: this slice is one extra output-sized XLA pass; callers that can
    # consume the (num_tiles*tile_h, w_pad) slab directly should skip it.
    return out_padded[:Ho, :Wo]


def _reference_corr2d(x, k, b):
    KH, KW = k.shape
    Ho, Wo = x.shape[0] - KH + 1, x.shape[1] - KW + 1
    out = jnp.zeros((Ho, Wo), jnp.float32)
    for i in range(KH):
        for j in range(KW):
            out = out + x[i:i + Ho, j:j + Wo] * k[i, j]
    return out + b[0]


if __name__ == "__main__":
    key = jax.random.PRNGKey(0)
    k_x, k_w, k_b, k_x2 = jax.random.split(key, 4)

    KH, KW = 3, 3
    weight = jax.random.normal(k_w, (KH, KW), dtype=jnp.float32)   # torch.randn(kernel_size)
    bias = jax.random.normal(k_b, (1,), dtype=jnp.float32)         # torch.randn(1)

    # Small image -> resident fast path (exact-shape output, no pad/slice).
    x_small = jax.random.normal(k_x, (16, 16), dtype=jnp.float32)
    out_small = jax.block_until_ready(conv2d_forward(x_small, weight, bias))
    ref_small = _reference_corr2d(x_small, weight, bias)
    assert out_small.shape == (14, 14)
    assert jnp.allclose(out_small, ref_small, atol=1e-5, rtol=1e-5)

    # Larger image, tiled path forced via a tiny resident budget so the manual
    # double-buffered pipeline (including the clamped last tile) is exercised.
    x_big = jax.random.normal(k_x2, (300, 200), dtype=jnp.float32)
    out_big = jax.block_until_ready(
        conv2d_forward(x_big, weight, bias, resident_budget_bytes=1024))
    ref_big = _reference_corr2d(x_big, weight, bias)
    assert out_big.shape == (298, 198)
    assert jnp.allclose(out_big, ref_big, atol=1e-4, rtol=1e-4)

    print("KERNEL_OK")
</pallas_src>

<mosaic_0001>
module attributes {stable_mosaic.version = 11 : i64} {
  func.func @kernel(%arg0: memref<9xf32, #tpu.memory_space<smem>>, %arg1: memref<1xf32, #tpu.memory_space<smem>>, %arg2: memref<16x16xf32, #tpu.memory_space<vmem>>, %arg3: memref<14x14xf32, #tpu.memory_space<vmem>>) attributes {dimension_semantics = [], scalar_prefetch = 0 : i64, scratch_operands = 0 : i64, tpu.core_type = #tpu.core_type<tc>} {
    %c0 = arith.constant 0 : index
    %c0_0 = arith.constant 0 : index
    %0 = vector.load %arg2[%c0, %c0_0] : memref<16x16xf32, #tpu.memory_space<vmem>>, vector<16x16xf32>
    %1 = vector.extract_strided_slice %0 {offsets = [0, 0], sizes = [14, 14], strides = [1, 1]} : vector<16x16xf32> to vector<14x14xf32>
    %c0_1 = arith.constant 0 : index
    %2 = memref.load %arg0[%c0_1] : memref<9xf32, #tpu.memory_space<smem>>
    %3 = vector.broadcast %2 : f32 to vector<14x14xf32>
    %4 = arith.mulf %1, %3 : vector<14x14xf32>
    %5 = vector.extract_strided_slice %0 {offsets = [0, 1], sizes = [14, 14], strides = [1, 1]} : vector<16x16xf32> to vector<14x14xf32>
    %c1 = arith.constant 1 : index
    %6 = memref.load %arg0[%c1] : memref<9xf32, #tpu.memory_space<smem>>
    %7 = vector.broadcast %6 : f32 to vector<14x14xf32>
    %8 = arith.mulf %5, %7 : vector<14x14xf32>
    %9 = arith.addf %4, %8 : vector<14x14xf32>
    %10 = vector.extract_strided_slice %0 {offsets = [0, 2], sizes = [14, 14], strides = [1, 1]} : vector<16x16xf32> to vector<14x14xf32>
    %c2 = arith.constant 2 : index
    %11 = memref.load %arg0[%c2] : memref<9xf32, #tpu.memory_space<smem>>
    %12 = vector.broadcast %11 : f32 to vector<14x14xf32>
    %13 = arith.mulf %10, %12 : vector<14x14xf32>
    %14 = arith.addf %9, %13 : vector<14x14xf32>
    %15 = vector.extract_strided_slice %0 {offsets = [1, 0], sizes = [14, 14], strides = [1, 1]} : vector<16x16xf32> to vector<14x14xf32>
    %c3 = arith.constant 3 : index
    %16 = memref.load %arg0[%c3] : memref<9xf32, #tpu.memory_space<smem>>
    %17 = vector.broadcast %16 : f32 to vector<14x14xf32>
    %18 = arith.mulf %15, %17 : vector<14x14xf32>
    %19 = arith.addf %14, %18 : vector<14x14xf32>
    %20 = vector.extract_strided_slice %0 {offsets = [1, 1], sizes = [14, 14], strides = [1, 1]} : vector<16x16xf32> to vector<14x14xf32>
    %c4 = arith.constant 4 : index
    %21 = memref.load %arg0[%c4] : memref<9xf32, #tpu.memory_space<smem>>
    %22 = vector.broadcast %21 : f32 to vector<14x14xf32>
    %23 = arith.mulf %20, %22 : vector<14x14xf32>
    %24 = arith.addf %19, %23 : vector<14x14xf32>
    %25 = vector.extract_strided_slice %0 {offsets = [1, 2], sizes = [14, 14], strides = [1, 1]} : vector<16x16xf32> to vector<14x14xf32>
    %c5 = arith.constant 5 : index
    %26 = memref.load %arg0[%c5] : memref<9xf32, #tpu.memory_space<smem>>
    %27 = vector.broadcast %26 : f32 to vector<14x14xf32>
    %28 = arith.mulf %25, %27 : vector<14x14xf32>
    %29 = arith.addf %24, %28 : vector<14x14xf32>
    %30 = vector.extract_strided_slice %0 {offsets = [2, 0], sizes = [14, 14], strides = [1, 1]} : vector<16x16xf32> to vector<14x14xf32>
    %c6 = arith.constant 6 : index
    %31 = memref.load %arg0[%c6] : memref<9xf32, #tpu.memory_space<smem>>
    %32 = vector.broadcast %31 : f32 to vector<14x14xf32>
    %33 = arith.mulf %30, %32 : vector<14x14xf32>
    %34 = arith.addf %29, %33 : vector<14x14xf32>
    %35 = vector.extract_strided_slice %0 {offsets = [2, 1], sizes = [14, 14], strides = [1, 1]} : vector<16x16xf32> to vector<14x14xf32>
    %c7 = arith.constant 7 : index
    %36 = memref.load %arg0[%c7] : memref<9xf32, #tpu.memory_space<smem>>
    %37 = vector.broadcast %36 : f32 to vector<14x14xf32>
    %38 = arith.mulf %35, %37 : vector<14x14xf32>
    %39 = arith.addf %34, %38 : vector<14x14xf32>
    %40 = vector.extract_strided_slice %0 {offsets = [2, 2], sizes = [14, 14], strides = [1, 1]} : vector<16x16xf32> to vector<14x14xf32>
    %c8 = arith.constant 8 : index
    %41 = memref.load %arg0[%c8] : memref<9xf32, #tpu.memory_space<smem>>
    %42 = vector.broadcast %41 : f32 to vector<14x14xf32>
    %43 = arith.mulf %40, %42 : vector<14x14xf32>
    %44 = arith.addf %39, %43 : vector<14x14xf32>
    %c0_2 = arith.constant 0 : index
    %45 = memref.load %arg1[%c0_2] : memref<1xf32, #tpu.memory_space<smem>>
    %46 = vector.broadcast %45 : f32 to vector<14x14xf32>
    %47 = arith.addf %44, %46 : vector<14x14xf32>
    %c0_3 = arith.constant 0 : index
    %c0_4 = arith.constant 0 : index
    %48 = vector.load %arg3[%c0_3, %c0_4] : memref<14x14xf32, #tpu.memory_space<vmem>>, vector<14x14xf32>
    tpu.vector_store %arg3[%c0_3, %c0_4], %47 {strides = array<i32>} : memref<14x14xf32, #tpu.memory_space<vmem>>, vector<14x14xf32>,
    return
  }
}

</mosaic_0001>

<bundles_post_ra>
// kernel: conv2d_forward.1
= control target key start
LH: loop header
LB: loop body
LE: loop exit
PB: predicated region body
PF: predicated region fallthrough
CT: control target
= control target key end

     0   :  { %9 = vsyncpa [#allocation6], 0  ;;  %s360_s0 = inlined_call_operand.vmem [shape: f32[9], index: 0, kind: input, shape index: {}]   ;;  %s361_s1 = inlined_call_operand.<no memory space> [shape: f32[1], index: 1, kind: input, shape index: {}]   ;;  %s362_s2 = inlined_call_operand.hbm [shape: f32[16,16], index: 2, kind: input, shape index: {}]   ;;  %s363_s3 = inlined_call_operand.hbm [shape: f32[14,14], index: 3, kind: output, shape index: {}]  }
   0x1   :  { %10 = vsyncpa [#allocation4], 0 }
   0x2   :  { %11 = vsyncpa [#allocation5], 0  ;;  %s18_s14 = sshll.u32 %s360_s0, 4  ;;  %s19_s14 = int_to_ptr.vmem [resolvable:$true] %s18_s14 }
   0x3   :  { %s214_s15 = scalar_lea.vmem %s19_s14, 16  ;;  %p219_p1 = scmp.lt.s32.totalorder %s19_s14, %s19_s14 }
   0x4   :  { %p215_p0 = scmp.ne.s32.totalorder %s19_s14, %s214_s15  ;;  %p220_p2 = scmp.lt.s32.totalorder %s214_s15, %s214_s15 }
   0x6   :  { %p221_p3 = por %p220_p2, %p219_p1 }
   0x8   :  { %p222_p4 = pnand %p221_p3, %p215_p0 }
   0xa   :  { %225 = shalt.err (!%p222_p4)
}
   0xb   :  { %s272_s16 = smov [#allocation3]   ;;  %s273_s17 = smov [#allocation7]  }
   0xc   :  { %21 = dma.vmem_to_smem %s19_s14, 16, %s272_s16, [#allocation6]  }
   0xd   :  { %s29_s18 = sshll.u32 %s273_s17, 4  ;;  %s30_s18 = int_to_ptr.vmem [resolvable:$true] %s29_s18 }
   0xe   :  { %s234_s19 = scalar_lea.vmem %s30_s18, 256  ;;  %p239_p6 = scmp.lt.s32.totalorder %s30_s18, %s30_s18 }
   0xf   :  { %p235_p5 = scmp.ne.s32.totalorder %s30_s18, %s234_s19  ;;  %p240_p7 = scmp.lt.s32.totalorder %s234_s19, %s234_s19 }
  0x11   :  { %p241_p8 = por %p240_p7, %p239_p6 }
  0x13   :  { %p242_p9 = pnand %p241_p8, %p235_p5 }
  0x15   :  { %245 = shalt.err (!%p242_p9)
}
  0x16   :  { %s274_s0 = smov 128   ;;  %s275_s20 = smov 8  }
  0x17   :  { %35 = dma.hbm_to_vmem [thread:$0]  %s362_s2, 256, %s30_s18, [#allocation4], %s274_s0, %s274_s0, %s275_s20  }
  0x18   :  { %266 = dma.done.wait [#allocation6], 16  }
  0x19   :  { %267 = vsyncadd [#allocation6], 4294967280 }
  0x1a   :  { %268 = dma.done.wait [#allocation4], 256  }
  0x1b   :  { %269 = vsyncadd [#allocation4], 4294967040 }
  0x1c   :  { %42 = sfence }
  0x1d   :  { %s200_s23 = sld [smem:[#allocation3 + $0x2]]  ;;  %v308_v0 = vld [vmem:[#allocation7] sm:$0xff]  ;;  %v310_v1 = vld [vmem:[#allocation7 + $0x8] sm:$0xff]  ;;  %s276_s30 = smov 126   ;;  %vm83_vm0 = vcmask 1046528   ;;  %vm131_vm1 = vcmask 1045504  }
  0x1e   :  { %s199_s24 = sld [smem:[#allocation3 + $0x1]]  ;;  %s277_s4 = smov 127   ;;  %vm179_vm2 = vcmask 111616   ;;  %vm177_vm3 = vcmask 113664  }
  0x1f   :  { %s202_s25 = sld [smem:[#allocation3 + $0x4]]  ;;  %s278_s8 = smov [#allocation8]  }
  0x20   :  { %s203_s26 = sld [smem:[#allocation3 + $0x5]]  ;;  %s186_s9 = sshll.u32 %s278_s8, 4  ;;  %s187_s9 = int_to_ptr.vmem [resolvable:$true] %s186_s9 }
  0x21   :  { %s205_s27 = sld [smem:[#allocation3 + $0x7]]  ;;  %s246_s10 = scalar_lea.vmem %s187_s9, 256 }
  0x22   :  { %s312_s28 = sld [smem:[#allocation3 + $0x8]]  ;;  %p247_p10 = scmp.ne.s32.totalorder %s187_s9, %s246_s10 }
  0x23   :  { %v64_v2 = vstv %s200_s23  ;;  %s201_s2 = sld [smem:[#allocation3 + $0x3]]  ;;  %p251_p11 = scmp.lt.s32.totalorder %s187_s9, %s187_s9 }
  0x24   :  { %v65_v3 = vmul.f32 %v64_v2, %v308_v0  ;;  %v50_v4 = vstv %s199_s24  ;;  %s316_s29 = sld [smem:[#allocation3 + $0x6]]  ;;  %v66_v7 = vmul.f32 %v64_v2, %v310_v1  ;;  %p252_p12 = scmp.lt.s32.totalorder %s246_s10, %s246_s10 }
  0x25   :  { %v51_v5 = vmul.f32 %v50_v4, %v308_v0  ;;  %v92_v6 = vstv %s202_s25  ;;  %v52_v11 = vmul.f32 %v50_v4, %v310_v1  ;;  %s45_s5 = sld [smem:[#allocation3]] }
  0x26   :  { %69 = vrot.lane.b32.xlu1 %v65_v3, %s276_s30  ;;  %v93_v8 = vmul.f32 %v92_v6, %v308_v0  ;;  %v94_v9 = vmul.f32 %v92_v6, %v310_v1  ;;  %v109_v10 = vstv %s203_s26  ;;  %p253_p13 = por %p252_p12, %p251_p11 }
  0x27   :  { %55 = vrot.lane.b32.xlu0 %v51_v5, %s277_s4  ;;  %v111_v12 = vmul.f32 %v109_v10, %v310_v1  ;;  %v140_v13 = vstv %s205_s27  ;;  %v110_v16 = vmul.f32 %v109_v10, %v308_v0 }
  0x28   :  { %v98_v14 = vrot.slane %v94_v9, 1  ;;  %v97_v15 = vrot.slane %v93_v8, 1  ;;  %v142_v17 = vmul.f32 %v140_v13, %v310_v1  ;;  %v141_v19 = vmul.f32 %v140_v13, %v308_v0  ;;  %p254_p0 = pnand %p253_p13, %p247_p10 }
  0x29   :  { %v115_v18 = vrot.slane %v111_v12, 1  ;;  %v114_v21 = vrot.slane %v110_v16, 1  ;;  %v78_v22 = vstv %s201_s2  ;;  %v157_v24 = vstv %s312_s28 }
  0x2a   :  { %71 = vrot.lane.b32.xlu1 %v66_v7, %s276_s30  ;;  %v99_v20 = vsel %vm83_vm0, %v97_v15, %v98_v14  ;;  %v126_v23 = vstv %s316_s29  ;;  %v79_v25 = vmul.f32 %v78_v22, %v308_v0  ;;  %v80_v26 = vmul.f32 %v78_v22, %v310_v1 }
  0x2b   :  { %57 = vrot.lane.b32.xlu0 %v52_v11, %s277_s4  ;;  %v127_v27 = vmul.f32 %v126_v23, %v308_v0  ;;  %v146_v28 = vrot.slane %v142_v17, 2  ;;  %v128_v29 = vmul.f32 %v126_v23, %v310_v1  ;;  %v145_v30 = vrot.slane %v141_v19, 2 }
  0x2c   :  { %v84_v31 = vrot.slane %v79_v25, 1  ;;  %v85_v32 = vrot.slane %v80_v26, 1  ;;  %v116_v34 = vsel %vm83_vm0, %v114_v21, %v115_v18  ;;  %v158_v35 = vmul.f32 %v157_v24, %v308_v0 }
  0x2d   :  { %v132_v33 = vrot.slane %v127_v27, 2  ;;  %v159_v36 = vmul.f32 %v157_v24, %v310_v1  ;;  %v133_v37 = vrot.slane %v128_v29, 2  ;;  %v147_v40 = vsel %vm131_vm1, %v145_v30, %v146_v28 }
  0x2e   :  { %102 = vrot.lane.b32.xlu1 %v98_v14, %s277_s4  ;;  %v86_v38 = vsel %vm83_vm0, %v84_v31, %v85_v32  ;;  %v162_v42 = vrot.slane %v158_v35, 2  ;;  %v46_v44 = vstv %s45_s5  ;;  %v174_v7 = vstv %s361_s1 }
  0x2f   :  { %100 = vrot.lane.b32.xlu0 %v99_v20, %s277_s4  ;;  %v134_v39 = vsel %vm131_vm1, %v132_v33, %v133_v37  ;;  %v163_v41 = vrot.slane %v159_v36, 2  ;;  %v47_v45 = vmul.f32 %v46_v44, %v308_v0  ;;  %v48_v49 = vmul.f32 %v46_v44, %v310_v1 }
  0x31   :  { %v164_v43 = vsel %vm131_vm1, %v162_v42, %v163_v41 }
  0x32   :  { %119 = vrot.lane.b32.xlu1 %v115_v18, %s276_s30 }
  0x33   :  { %117 = vrot.lane.b32.xlu0 %v116_v34, %s276_s30 }
  0x36   :  { %150 = vrot.lane.b32.xlu1 %v146_v28, %s277_s4 }
  0x37   :  { %148 = vrot.lane.b32.xlu0 %v147_v40, %s277_s4 }
  0x3a   :  { %167 = vrot.lane.b32.xlu1 %v163_v41, %s276_s30 }
  0x3b   :  { %165 = vrot.lane.b32.xlu0 %v164_v43, %s276_s30 }
  0x98   :  { %v70_v46 = vpop.permute.xlu1 %69 }
  0x99   :  { %v56_v47 = vpop.permute.xlu0 %55 }
  0x9a   :  { %v61_v48 = vadd.f32 %v56_v47, %v47_v45 }
  0x9c   :  { %v75_v50 = vadd.f32 %v70_v46, %v61_v48  ;;  %v72_v51 = vpop.permute.xlu1 %71 }
  0x9d   :  { %v58_v52 = vpop.permute.xlu0 %57 }
  0x9e   :  { %v62_v53 = vadd.f32 %v58_v52, %v48_v49  ;;  %v89_v54 = vadd.f32 %v86_v38, %v75_v50 }
  0xa0   :  { %v76_v55 = vadd.f32 %v72_v51, %v62_v53  ;;  %v103_v56 = vpop.permute.xlu1 %102 }
  0xa1   :  { %v101_v57 = vpop.permute.xlu0 %100 }
  0xa2   :  { %v90_v58 = vadd.f32 %v85_v32, %v76_v55  ;;  %v106_v60 = vadd.f32 %v101_v57, %v89_v54 }
  0xa4   :  { %v107_v59 = vadd.f32 %v103_v56, %v90_v58  ;;  %v120_v61 = vpop.permute.xlu1 %119 }
  0xa5   :  { %v118_v62 = vpop.permute.xlu0 %117 }
  0xa6   :  { %v124_v63 = vadd.f32 %v120_v61, %v107_v59  ;;  %v123_v0 = vadd.f32 %v118_v62, %v106_v60 }
  0xa8   :  { %v151_v2 = vpop.permute.xlu1 %150  ;;  %v138_v3 = vadd.f32 %v133_v37, %v124_v63  ;;  %v137_v4 = vadd.f32 %v134_v39, %v123_v0 }
  0xa9   :  { %v149_v5 = vpop.permute.xlu0 %148 }
  0xaa   :  { %v155_v1 = vadd.f32 %v151_v2, %v138_v3  ;;  %v154_v6 = vadd.f32 %v149_v5, %v137_v4 }
  0xac   :  { %v168_v8 = vpop.permute.xlu1 %167 }
  0xad   :  { %v172_v9 = vadd.f32 %v168_v8, %v155_v1  ;;  %v166_v10 = vpop.permute.xlu0 %165 }
  0xae   :  { %v171_v11 = vadd.f32 %v166_v10, %v154_v6 }
  0xaf   :  { %v176_v12 = vadd.f32 %v174_v7, %v172_v9 }
  0xb0   :  { %v175_v13 = vadd.f32 %v174_v7, %v171_v11 }
  0xb1   :  { %180 = vst.msk [vmem:[#allocation8 + $0x8] sm:$0x3f] %vm179_vm2, %v176_v12 }
  0xb2   :  { %178 = vst.msk [vmem:[#allocation8] sm:$0xff] %vm177_vm3, %v175_v13 }
  0xb3   :  { %257 = shalt.err (!%p254_p0)
}
  0xb4   :  { %192 = dma.vmem_to_hbm [thread:$0]  %s187_s9, 256, %s363_s3, [#allocation5], %s274_s0, %s274_s0, %s275_s20  }
  0xb5   :  { %270 = dma.done.wait [#allocation5], 256  }
  0xb6   :  { %271 = vsyncadd [#allocation5], 4294967040 }
  0xb7   :  { %196 = vsyncpa [#allocation4], 1 }
  0xb8   :  { %197 = vsyncpa [#allocation5], 1 }
  0xb9   :  { %198 = vsyncpa [#allocation6], 1 }

</bundles_post_ra>
